<compile_context>
chip_gen: v6e
topology: v6e:2x2x1
jax: 0.10.0
libtpu: 0.0.40
codegen_flags: <defaults>
</compile_context>

<pallas_src>
import jax
import jax.numpy as jnp
from jax import lax
from jax.experimental import pallas as pl
from jax.experimental.pallas import tpu as pltpu

IN_DIM = 32
WINDOW = 2
BATCH = 8
EPS = 1e-12  # torch.nn.functional.normalize eps


# ----------------------------------------------------------------------------- kernel
def pt_final_layer_kernel(x_ref, wk_ref, bk_ref, wq_ref, bq_ref,
                          ssum_ref, sexp_ref, sgat_ref, o_ref):
    # x_ref : (tb, S*D) -- native contiguous layout, lane-dense.
    x = x_ref[...].astype(jnp.float32)

    # All K projections (block-diagonal weight) and the replicated q projection:
    # two K=S*D MXU matmuls, no per-segment weight pushes, no slicing.
    #   k_all[b, s*D+e] = <x_s[b], wk_s[:, e]> + bk_s[e]
    #   q_rep[b, s*D+e] = q[b, e]   (same q replicated for every segment s)
    k_all = jnp.dot(x, wk_ref[...], preferred_element_type=jnp.float32) + bk_ref[...]
    q_rep = jnp.dot(x, wq_ref[...], preferred_element_type=jnp.float32) + bq_ref[...]

    # logits[b, s] = <q_b, k_{s,b}>: lane-dense product, segment fold on the MXU.
    logits = jnp.dot(k_all * q_rep, ssum_ref[...],
                     preferred_element_type=jnp.float32)            # (tb, S)

    # Softmax over the S segments (numerically stable; divide -> EUP reciprocal).
    m = jnp.max(logits, axis=-1, keepdims=True)
    e = jnp.exp(logits - m)
    attn = e * pl.reciprocal(jnp.sum(e, axis=-1, keepdims=True), approx=True)

    # Attention-weighted sum of the raw input segments, all lane-dense:
    #   attn -> (tb, S*D) via the expand matrix, multiply, fold segments via gather matrix.
    xw = x * jnp.dot(attn, sexp_ref[...], preferred_element_type=jnp.float32)   # (tb, S*D)
    out = jnp.dot(xw, sgat_ref[...], preferred_element_type=jnp.float32)        # (tb, D)

    # F.normalize(p=2, dim=1): v / max(||v||, eps) == v * rsqrt(max(||v||^2, eps^2)).
    ss = jnp.sum(out * out, axis=-1, keepdims=True)
    o_ref[...] = (out * lax.rsqrt(jnp.maximum(ss, EPS * EPS))).astype(o_ref.dtype)
    # Note: the (tb, D=32) store is the one remaining lane-sparse access (output is
    # only 128 B/row); packing 4 rows/vreg before the store is a small v5e-only win.


# ----------------------------------------------------------------------------- wrapper
def _round8(n):
    return ((n + 7) // 8) * 8


def _pick_tile(B, block_b):
    """Batch tile: multiple of 8 sublanes, big (mem-bound), >=2 tiles when possible."""
    Br = _round8(B)
    tb = _round8(min(block_b, Br))
    # v7x has 2 TensorCores; make sure the "parallel" batch grid has >= 2 tiles
    # whenever the batch is large enough to split.
    if Br >= 16 and pl.cdiv(Br, tb) < 2:
        tb = _round8(pl.cdiv(Br, 2))
    return tb


def pack_params(params, *, window=WINDOW, in_dim=IN_DIM):
    """One-time packing of the per-segment Linear layers into big lane-dense operands."""
    S, D = 2 * window + 1, in_dim
    SD = S * D
    wk, bk = params["wk"], params["bk"]          # (S, D, D), (S, 1, D)
    wq, bq = params["wq"], params["bq"]          # (D, D),    (1, D)
    f32 = jnp.float32

    # Block-diagonal K weight: wk_blk[s*D+d, t*D+e] = delta(s,t) * wk[s, d, e]
    wk_blk = jnp.einsum("st,sde->sdte", jnp.eye(S, dtype=f32), wk.astype(f32)).reshape(SD, SD)
    bk_flat = bk.astype(f32).reshape(1, SD)

    # Replicated q weight: rows of the center segment hold [wq wq ... wq]
    wq_rep = jnp.zeros((SD, SD), f32).at[window * D:(window + 1) * D, :].set(
        jnp.tile(wq.astype(f32), (1, S)))
    bq_rep = jnp.tile(bq.astype(f32).reshape(1, D), (1, S))

    # Constant 0/1 fold / broadcast matrices (segment-structured).
    ssum = jnp.kron(jnp.eye(S, dtype=f32), jnp.ones((D, 1), f32))     # (SD, S)
    sexp = ssum.T                                                     # (S, SD)
    sgat = jnp.tile(jnp.eye(D, dtype=f32), (S, 1))                    # (SD, D)

    return dict(wk_blk=wk_blk, bk=bk_flat, wq_rep=wq_rep, bq_rep=bq_rep,
                ssum=ssum, sexp=sexp, sgat=sgat)


def pt_final_layer(x, packed, *, block_b=4096):
    """x: (B, S*D) in its native layout (f32 or bf16). packed: from pack_params()."""
    B, SD = x.shape
    D = packed["sgat"].shape[1]
    S = SD // D
    assert S * D == SD

    tb = _pick_tile(B, block_b)
    grid = (pl.cdiv(B, tb),)          # ragged last tile: OOB writes are masked

    rep2 = lambda i: (0, 0)           # replicated operands
    out = pl.pallas_call(
        pt_final_layer_kernel,
        out_shape=jax.ShapeDtypeStruct((B, D), x.dtype),
        grid=grid,
        in_specs=[
            pl.BlockSpec((tb, SD), lambda i: (i, 0)),   # x tile (pipelined over batch)
            pl.BlockSpec((SD, SD), rep2),               # wk_blk
            pl.BlockSpec((1, SD), rep2),                # bk
            pl.BlockSpec((SD, SD), rep2),               # wq_rep
            pl.BlockSpec((1, SD), rep2),                # bq_rep
            pl.BlockSpec((SD, S), rep2),                # segment-sum matrix
            pl.BlockSpec((S, SD), rep2),                # segment-expand matrix
            pl.BlockSpec((SD, D), rep2),                # segment-gather matrix
        ],
        out_specs=pl.BlockSpec((tb, D), lambda i: (i, 0)),
        compiler_params=pltpu.CompilerParams(
            dimension_semantics=("parallel",),          # batch tiles shard across v7x TCs
            vmem_limit_bytes=32 * 1024 * 1024,          # safe on 64 MiB v7x VMEM
        ),
    )(x, packed["wk_blk"], packed["bk"], packed["wq_rep"], packed["bq_rep"],
      packed["ssum"], packed["sexp"], packed["sgat"])
    return out


# ----------------------------------------------------------------------------- reference
def init_params(key, in_dim, window):
    """Deterministic init mimicking nn.Linear default (uniform +/- 1/sqrt(in))."""
    S = 2 * window + 1
    bound = 1.0 / (in_dim ** 0.5)
    ks = jax.random.split(key, 4)
    u = lambda k, shape: jax.random.uniform(k, shape, jnp.float32, -bound, bound)
    return {
        "wq": u(ks[0], (in_dim, in_dim)),
        "bq": u(ks[1], (1, in_dim)),
        # segment order: [k_prev_0..k_prev_{W-1}, k_cent, k_next_0..k_next_{W-1}]
        "wk": u(ks[2], (S, in_dim, in_dim)),
        "bk": u(ks[3], (S, 1, in_dim)),
    }


def pt_final_layer_ref(x, params, *, window=WINDOW, in_dim=IN_DIM):
    """Plain-JAX mirror of the PyTorch PTFinalLayer.forward."""
    W, D = window, in_dim
    S = 2 * W + 1
    segs = [x[:, s * D:(s + 1) * D] for s in range(S)]
    x_cent = segs[W]
    q = x_cent @ params["wq"] + params["bq"]
    logits = jnp.stack(
        [jnp.sum(q * (segs[s] @ params["wk"][s] + params["bk"][s]), axis=-1)
         for s in range(S)], axis=1)                      # (B, S)
    attn = jax.nn.softmax(logits, axis=1)
    out = x_cent * attn[:, W:W + 1]
    for i in range(W):
        out = out + segs[i] * attn[:, i:i + 1] + segs[W + 1 + i] * attn[:, W + 1 + i:W + 2 + i]
    n = jnp.sqrt(jnp.sum(out * out, axis=1, keepdims=True))
    return out / jnp.maximum(n, EPS)


if __name__ == "__main__":
    key = jax.random.PRNGKey(0)
    kx, kp = jax.random.split(key)
    S = 2 * WINDOW + 1
    x = jax.random.normal(kx, (BATCH, S * IN_DIM), jnp.float32)
    params = init_params(kp, IN_DIM, WINDOW)
    packed = pack_params(params, window=WINDOW, in_dim=IN_DIM)

    out = jax.block_until_ready(pt_final_layer(x, packed))

    ref = pt_final_layer_ref(x, params)
    assert out.shape == (BATCH, IN_DIM)
    assert jnp.allclose(out, ref, rtol=2e-3, atol=2e-3), "mismatch vs JAX reference"

    print("KERNEL_OK")
</pallas_src>

<mosaic_0001>
module attributes {stable_mosaic.version = 11 : i64} {
  func.func @pt_final_layer_kernel(%arg0: i32, %arg1: memref<8x160xf32, #tpu.memory_space<vmem>>, %arg2: memref<160x160xf32, #tpu.memory_space<vmem>>, %arg3: memref<1x160xf32, #tpu.memory_space<vmem>>, %arg4: memref<160x160xf32, #tpu.memory_space<vmem>>, %arg5: memref<1x160xf32, #tpu.memory_space<vmem>>, %arg6: memref<160x5xf32, #tpu.memory_space<vmem>>, %arg7: memref<5x160xf32, #tpu.memory_space<vmem>>, %arg8: memref<160x32xf32, #tpu.memory_space<vmem>>, %arg9: memref<8x32xf32, #tpu.memory_space<vmem>>) attributes {dimension_semantics = [#tpu.dimension_semantics<parallel>], iteration_bounds = array<i64: 1>, scalar_prefetch = 0 : i64, scratch_operands = 0 : i64, tpu.core_type = #tpu.core_type<tc>, window_params = [{transform_indices = @transform_0, window_bounds = array<i64: 8, 160>}, {pipeline_mode = #tpu.pipeline_mode<synchronous>, transform_indices = @transform_1, window_bounds = array<i64: 160, 160>}, {pipeline_mode = #tpu.pipeline_mode<synchronous>, transform_indices = @transform_2, window_bounds = array<i64: 1, 160>}, {pipeline_mode = #tpu.pipeline_mode<synchronous>, transform_indices = @transform_3, window_bounds = array<i64: 160, 160>}, {pipeline_mode = #tpu.pipeline_mode<synchronous>, transform_indices = @transform_4, window_bounds = array<i64: 1, 160>}, {pipeline_mode = #tpu.pipeline_mode<synchronous>, transform_indices = @transform_5, window_bounds = array<i64: 160, 5>}, {pipeline_mode = #tpu.pipeline_mode<synchronous>, transform_indices = @transform_6, window_bounds = array<i64: 5, 160>}, {pipeline_mode = #tpu.pipeline_mode<synchronous>, transform_indices = @transform_7, window_bounds = array<i64: 160, 32>}, {transform_indices = @transform_8, window_bounds = array<i64: 8, 32>}]} {
    %c0 = arith.constant 0 : index
    %c0_0 = arith.constant 0 : index
    %0 = vector.load %arg1[%c0, %c0_0] : memref<8x160xf32, #tpu.memory_space<vmem>>, vector<8x160xf32>
    %c0_1 = arith.constant 0 : index
    %c0_2 = arith.constant 0 : index
    %1 = vector.load %arg2[%c0_1, %c0_2] : memref<160x160xf32, #tpu.memory_space<vmem>>, vector<160x160xf32>
    %cst = arith.constant dense<0.000000e+00> : vector<8x160xf32>
    %2 = tpu.matmul %0, %1, %cst {dimension_numbers = #tpu.dot_dimension_numbers<[1], [0], [0], [1], [0, 0, 1, 1], [], []>} : vector<8x160xf32>, vector<160x160xf32>, vector<8x160xf32> -> vector<8x160xf32>
    %c0_3 = arith.constant 0 : index
    %c0_4 = arith.constant 0 : index
    %3 = vector.load %arg3[%c0_3, %c0_4] : memref<1x160xf32, #tpu.memory_space<vmem>>, vector<1x160xf32>
    %4 = vector.broadcast %3 : vector<1x160xf32> to vector<8x160xf32>
    %5 = arith.addf %2, %4 : vector<8x160xf32>
    %c0_5 = arith.constant 0 : index
    %c0_6 = arith.constant 0 : index
    %6 = vector.load %arg4[%c0_5, %c0_6] : memref<160x160xf32, #tpu.memory_space<vmem>>, vector<160x160xf32>
    %cst_7 = arith.constant dense<0.000000e+00> : vector<8x160xf32>
    %7 = tpu.matmul %0, %6, %cst_7 {dimension_numbers = #tpu.dot_dimension_numbers<[1], [0], [0], [1], [0, 0, 1, 1], [], []>} : vector<8x160xf32>, vector<160x160xf32>, vector<8x160xf32> -> vector<8x160xf32>
    %c0_8 = arith.constant 0 : index
    %c0_9 = arith.constant 0 : index
    %8 = vector.load %arg5[%c0_8, %c0_9] : memref<1x160xf32, #tpu.memory_space<vmem>>, vector<1x160xf32>
    %9 = vector.broadcast %8 : vector<1x160xf32> to vector<8x160xf32>
    %10 = arith.addf %7, %9 : vector<8x160xf32>
    %11 = arith.mulf %5, %10 : vector<8x160xf32>
    %c0_10 = arith.constant 0 : index
    %c0_11 = arith.constant 0 : index
    %12 = vector.load %arg6[%c0_10, %c0_11] : memref<160x5xf32, #tpu.memory_space<vmem>>, vector<160x5xf32>
    %cst_12 = arith.constant dense<0.000000e+00> : vector<8x5xf32>
    %13 = tpu.matmul %11, %12, %cst_12 {dimension_numbers = #tpu.dot_dimension_numbers<[1], [0], [0], [1], [0, 0, 1, 1], [], []>} : vector<8x160xf32>, vector<160x5xf32>, vector<8x5xf32> -> vector<8x5xf32>
    %cst_13 = arith.constant dense<0xFF800000> : vector<8xf32>
    %14 = vector.multi_reduction <maximumf>, %13, %cst_13 [1] : vector<8x5xf32> to vector<8xf32>
    %15 = vector.shape_cast %14 : vector<8xf32> to vector<8x1xf32>
    %16 = vector.broadcast %15 : vector<8x1xf32> to vector<8x5xf32>
    %17 = arith.subf %13, %16 : vector<8x5xf32>
    %18 = math.exp %17 : vector<8x5xf32>
    %cst_14 = arith.constant dense<0.000000e+00> : vector<8xf32>
    %19 = vector.multi_reduction <add>, %18, %cst_14 [1] : vector<8x5xf32> to vector<8xf32>
    %20 = vector.shape_cast %19 : vector<8xf32> to vector<8x1xf32>
    %21 = tpu.reciprocal %20 {approx = true} : vector<8x1xf32> -> vector<8x1xf32>
    %22 = vector.broadcast %21 : vector<8x1xf32> to vector<8x5xf32>
    %23 = arith.mulf %18, %22 : vector<8x5xf32>
    %c0_15 = arith.constant 0 : index
    %c0_16 = arith.constant 0 : index
    %24 = vector.load %arg7[%c0_15, %c0_16] : memref<5x160xf32, #tpu.memory_space<vmem>>, vector<5x160xf32>
    %cst_17 = arith.constant dense<0.000000e+00> : vector<8x160xf32>
    %25 = tpu.matmul %23, %24, %cst_17 {dimension_numbers = #tpu.dot_dimension_numbers<[1], [0], [0], [1], [0, 0, 1, 1], [], []>} : vector<8x5xf32>, vector<5x160xf32>, vector<8x160xf32> -> vector<8x160xf32>
    %26 = arith.mulf %0, %25 : vector<8x160xf32>
    %c0_18 = arith.constant 0 : index
    %c0_19 = arith.constant 0 : index
    %27 = vector.load %arg8[%c0_18, %c0_19] : memref<160x32xf32, #tpu.memory_space<vmem>>, vector<160x32xf32>
    %cst_20 = arith.constant dense<0.000000e+00> : vector<8x32xf32>
    %28 = tpu.matmul %26, %27, %cst_20 {dimension_numbers = #tpu.dot_dimension_numbers<[1], [0], [0], [1], [0, 0, 1, 1], [], []>} : vector<8x160xf32>, vector<160x32xf32>, vector<8x32xf32> -> vector<8x32xf32>
    %29 = arith.mulf %28, %28 : vector<8x32xf32>
    %cst_21 = arith.constant dense<0.000000e+00> : vector<8xf32>
    %30 = vector.multi_reduction <add>, %29, %cst_21 [1] : vector<8x32xf32> to vector<8xf32>
    %31 = vector.shape_cast %30 : vector<8xf32> to vector<8x1xf32>
    %cst_22 = arith.constant 1.000000e-24 : f32
    %32 = vector.broadcast %cst_22 : f32 to vector<8x1xf32>
    %33 = arith.maximumf %31, %32 : vector<8x1xf32>
    %34 = math.rsqrt %33 : vector<8x1xf32>
    %35 = vector.broadcast %34 : vector<8x1xf32> to vector<8x32xf32>
    %36 = arith.mulf %28, %35 : vector<8x32xf32>
    %c0_23 = arith.constant 0 : index
    %c0_24 = arith.constant 0 : index
    %37 = vector.load %arg9[%c0_23, %c0_24] : memref<8x32xf32, #tpu.memory_space<vmem>>, vector<8x32xf32>
    tpu.vector_store %arg9[%c0_23, %c0_24], %36 {strides = array<i32>} : memref<8x32xf32, #tpu.memory_space<vmem>>, vector<8x32xf32>,
    return
  }
  func.func @transform_0(%arg0: i32) -> (i32, i32) {
    %c0_i32 = arith.constant 0 : i32
    %c0_i32_0 = arith.constant 0 : i32
    return %arg0, %c0_i32 : i32, i32
  }
  func.func @transform_1(%arg0: i32) -> (i32, i32) {
    %c0_i32 = arith.constant 0 : i32
    %c0_i32_0 = arith.constant 0 : i32
    %c0_i32_1 = arith.constant 0 : i32
    return %c0_i32, %c0_i32_0 : i32, i32
  }
  func.func @transform_2(%arg0: i32) -> (i32, i32) {
    %c0_i32 = arith.constant 0 : i32
    %c0_i32_0 = arith.constant 0 : i32
    %c0_i32_1 = arith.constant 0 : i32
    return %c0_i32, %c0_i32_0 : i32, i32
  }
  func.func @transform_3(%arg0: i32) -> (i32, i32) {
    %c0_i32 = arith.constant 0 : i32
    %c0_i32_0 = arith.constant 0 : i32
    %c0_i32_1 = arith.constant 0 : i32
    return %c0_i32, %c0_i32_0 : i32, i32
  }
  func.func @transform_4(%arg0: i32) -> (i32, i32) {
    %c0_i32 = arith.constant 0 : i32
    %c0_i32_0 = arith.constant 0 : i32
    %c0_i32_1 = arith.constant 0 : i32
    return %c0_i32, %c0_i32_0 : i32, i32
  }
  func.func @transform_5(%arg0: i32) -> (i32, i32) {
    %c0_i32 = arith.constant 0 : i32
    %c0_i32_0 = arith.constant 0 : i32
    %c0_i32_1 = arith.constant 0 : i32
    return %c0_i32, %c0_i32_0 : i32, i32
  }
  func.func @transform_6(%arg0: i32) -> (i32, i32) {
    %c0_i32 = arith.constant 0 : i32
    %c0_i32_0 = arith.constant 0 : i32
    %c0_i32_1 = arith.constant 0 : i32
    return %c0_i32, %c0_i32_0 : i32, i32
  }
  func.func @transform_7(%arg0: i32) -> (i32, i32) {
    %c0_i32 = arith.constant 0 : i32
    %c0_i32_0 = arith.constant 0 : i32
    %c0_i32_1 = arith.constant 0 : i32
    return %c0_i32, %c0_i32_0 : i32, i32
  }
  func.func @transform_8(%arg0: i32) -> (i32, i32) {
    %c0_i32 = arith.constant 0 : i32
    %c0_i32_0 = arith.constant 0 : i32
    return %arg0, %c0_i32 : i32, i32
  }
}

</mosaic_0001>

<bundles_post_ra>
// kernel: tpu_custom_call.1
= control target key start
LH: loop header
LB: loop body
LE: loop exit
PB: predicated region body
PF: predicated region fallthrough
CT: control target
= control target key end

     0   :  { %13 = vsyncpa [#allocation3], 0  ;;  %s1074_s0 = inlined_call_operand.vmem [shape: f32[8,160], index: 0, kind: input, shape index: {}]   ;;  %s1075_s1 = inlined_call_operand.vmem [shape: f32[160,160], index: 1, kind: input, shape index: {}]   ;;  %s1076_s2 = inlined_call_operand.vmem [shape: f32[1,160], index: 2, kind: input, shape index: {}]   ;;  %s1077_s3 = inlined_call_operand.hbm [shape: f32[160,160], index: 3, kind: input, shape index: {}]   ;;  %s1078_s4 = inlined_call_operand.vmem [shape: f32[1,160], index: 4, kind: input, shape index: {}]   ;;  %s1079_s5 = inlined_call_operand.vmem [shape: f32[160,5], index: 5, kind: input, shape index: {}]   ;;  %s1080_s6 = inlined_call_operand.hbm [shape: f32[5,160], index: 6, kind: input, shape index: {}]   ;;  %s1081_s7 = inlined_call_operand.vmem [shape: f32[160,32], index: 7, kind: input, shape index: {}]   ;;  %s1082_s8 = inlined_call_operand.hbm [shape: f32[8,32], index: 8, kind: output, shape index: {}]  }
   0x1   :  { %14 = vsyncpa [#allocation6], 0 }
   0x2   :  { %15 = vsyncpa [#allocation4], 0  ;;  %s702_s27 = smov [#allocation2]  }
   0x3   :  { %s27_s28 = sshll.u32 %s702_s27, 4  ;;  %s28_s28 = int_to_ptr.vmem [resolvable:$true] %s27_s28 }
   0x4   :  { %s644_s29 = scalar_lea.vmem %s28_s28, 5120  ;;  %p649_p1 = scmp.lt.s32.totalorder %s28_s28, %s28_s28 }
   0x5   :  { %p645_p0 = scmp.ne.s32.totalorder %s28_s28, %s644_s29  ;;  %p650_p2 = scmp.lt.s32.totalorder %s644_s29, %s644_s29 }
   0x7   :  { %p651_p3 = por %p650_p2, %p649_p1 }
   0x9   :  { %p652_p4 = pnand %p651_p3, %p645_p0 }
   0xb   :  { %655 = shalt.err (!%p652_p4)
}
   0xc   :  { %s703_s30 = smov 256   ;;  %s704_s9 = smov 16  }
   0xd   :  { %33 = dma.hbm_to_vmem [thread:$0]  %s1077_s3, 5120, %s28_s28, [#allocation3], %s703_s30, %s703_s30, %s704_s9  }
   0xe   :  { %s705_s12 = smov [#allocation5]  }
   0xf   :  { %s44_s13 = sshll.u32 %s705_s12, 4  ;;  %s45_s13 = int_to_ptr.vmem [resolvable:$true] %s44_s13 }
  0x10   :  { %s664_s14 = scalar_lea.vmem %s45_s13, 256  ;;  %p669_p6 = scmp.lt.s32.totalorder %s45_s13, %s45_s13 }
  0x11   :  { %p665_p5 = scmp.ne.s32.totalorder %s45_s13, %s664_s14  ;;  %p670_p7 = scmp.lt.s32.totalorder %s664_s14, %s664_s14 }
  0x13   :  { %p671_p8 = por %p670_p7, %p669_p6 }
  0x15   :  { %p672_p9 = pnand %p671_p8, %p665_p5 }
  0x17   :  { %675 = shalt.err (!%p672_p9)
}
  0x18   :  { %47 = dma.hbm_to_vmem [thread:$0]  %s1080_s6, 256, %s45_s13, [#allocation6]  }
  0x19   :  { %696 = dma.done.wait [#allocation3], 5120  }
  0x1a   :  { %697 = vsyncadd [#allocation3], 4294962176 }
  0x1b   :  { %698 = dma.done.wait [#allocation6], 256  }
  0x1c   :  { %699 = vsyncadd [#allocation6], 4294967040  ;;  %v89_v0 = vld [vmem:[%s1075_s1 + $0xf8] sm:$0xff]  ;;  %v88_v2 = vld [vmem:[%s1075_s1 + $0xf0] sm:$0xff]  ;;  %vm110_vm0 = vcmask 261120   ;;  %vm403_vm1 = vcmask 39936  }
  0x1d   :  { %v216_v1 = vld [vmem:[#allocation2 + $0xf8] sm:$0xff]  ;;  %114 = vmatprep.subr.mxu0 %v89_v0  ;;  %v215_v3 = vld [vmem:[#allocation2 + $0xf0] sm:$0xff]  ;;  %v87_v4 = vld [vmem:[%s1075_s1 + $0xe8] sm:$0xff]  ;;  %vm420_vm2 = vcmask 1044480  }
  0x1e   :  { %237 = vmatprep.subr.mxu1 %v216_v1  ;;  %v214_v5 = vld [vmem:[#allocation2 + $0xe8] sm:$0xff]  ;;  %115 = vmatpush1.msra.mxu0 %v88_v2  ;;  %v86_v6 = vld [vmem:[%s1075_s1 + $0xe0] sm:$0xff]  ;;  %v85_v8 = vld [vmem:[%s1075_s1 + $0xd8] sm:$0xff] }
  0x1f   :  { %238 = vmatpush1.msra.mxu1 %v215_v3  ;;  %v213_v7 = vld [vmem:[#allocation2 + $0xe0] sm:$0xff]  ;;  %116 = vmatprep.subr.mxu0 %v87_v4  ;;  %v212_v9 = vld [vmem:[#allocation2 + $0xd8] sm:$0xff]  ;;  %v84_v10 = vld [vmem:[%s1075_s1 + $0xd0] sm:$0xff] }
  0x20   :  { %239 = vmatprep.subr.mxu1 %v214_v5  ;;  %v211_v11 = vld [vmem:[#allocation2 + $0xd0] sm:$0xff]  ;;  %117 = vmatpush1.msra.mxu0 %v86_v6  ;;  %v83_v12 = vld [vmem:[%s1075_s1 + $0xc8] sm:$0xff]  ;;  %v82_v14 = vld [vmem:[%s1075_s1 + $0xc0] sm:$0xff] }
  0x21   :  { %240 = vmatpush1.msra.mxu1 %v213_v7  ;;  %v210_v13 = vld [vmem:[#allocation2 + $0xc8] sm:$0xff]  ;;  %118 = vmatprep.subr.mxu0 %v85_v8  ;;  %v209_v15 = vld [vmem:[#allocation2 + $0xc0] sm:$0xff]  ;;  %v81_v16 = vld [vmem:[%s1075_s1 + $0xb8] sm:$0xff] }
  0x22   :  { %241 = vmatprep.subr.mxu1 %v212_v9  ;;  %119 = vmatpush1.msra.mxu0 %v84_v10  ;;  %v208_v17 = vld [vmem:[#allocation2 + $0xb8] sm:$0xff]  ;;  %v80_v18 = vld [vmem:[%s1075_s1 + $0xb0] sm:$0xff]  ;;  %v79_v20 = vld [vmem:[%s1075_s1 + $0xa8] sm:$0xff] }
  0x23   :  { %242 = vmatpush1.msra.mxu1 %v211_v11  ;;  %120 = vmatprep.subr.mxu0 %v83_v12  ;;  %v207_v19 = vld [vmem:[#allocation2 + $0xb0] sm:$0xff]  ;;  %v206_v21 = vld [vmem:[#allocation2 + $0xa8] sm:$0xff]  ;;  %v78_v22 = vld [vmem:[%s1075_s1 + $0xa0] sm:$0xff] }
  0x24   :  { %243 = vmatprep.subr.mxu1 %v210_v13  ;;  %121 = vmatpush1.msra.mxu0 %v82_v14  ;;  %v205_v23 = vld [vmem:[#allocation2 + $0xa0] sm:$0xff]  ;;  %v77_v24 = vld [vmem:[%s1075_s1 + $0x98] sm:$0xff]  ;;  %v76_v26 = vld [vmem:[%s1075_s1 + $0x90] sm:$0xff] }
  0x25   :  { %244 = vmatpush1.msra.mxu1 %v209_v15  ;;  %122 = vmatprep.subr.mxu0 %v81_v16  ;;  %v204_v25 = vld [vmem:[#allocation2 + $0x98] sm:$0xff]  ;;  %v203_v27 = vld [vmem:[#allocation2 + $0x90] sm:$0xff]  ;;  %v75_v28 = vld [vmem:[%s1075_s1 + $0x88] sm:$0xff] }
  0x26   :  { %245 = vmatprep.subr.mxu1 %v208_v17  ;;  %123 = vmatpush1.msra.mxu0 %v80_v18  ;;  %v202_v29 = vld [vmem:[#allocation2 + $0x88] sm:$0xff]  ;;  %v74_v30 = vld [vmem:[%s1075_s1 + $0x80] sm:$0xff]  ;;  %v73_v32 = vld [vmem:[%s1075_s1 + $0x78] sm:$0xff] }
  0x27   :  { %246 = vmatpush1.msra.mxu1 %v207_v19  ;;  %124 = vmatprep.subr.mxu0 %v79_v20  ;;  %v201_v31 = vld [vmem:[#allocation2 + $0x80] sm:$0xff]  ;;  %v200_v33 = vld [vmem:[#allocation2 + $0x78] sm:$0xff]  ;;  %v72_v34 = vld [vmem:[%s1075_s1 + $0x70] sm:$0xff]  ;;  %v706_v19 = vmov 0.0  }
  0x28   :  { %247 = vmatprep.subr.mxu1 %v206_v21  ;;  %125 = vmatpush1.msra.mxu0 %v78_v22  ;;  %v199_v35 = vld [vmem:[#allocation2 + $0x70] sm:$0xff]  ;;  %v71_v36 = vld [vmem:[%s1075_s1 + $0x68] sm:$0xff]  ;;  %v70_v38 = vld [vmem:[%s1075_s1 + $0x60] sm:$0xff] }
  0x29   :  { %248 = vmatpush1.msra.mxu1 %v205_v23  ;;  %126 = vmatprep.subr.mxu0 %v77_v24  ;;  %v198_v37 = vld [vmem:[#allocation2 + $0x68] sm:$0xff]  ;;  %v197_v39 = vld [vmem:[#allocation2 + $0x60] sm:$0xff]  ;;  %v69_v40 = vld [vmem:[%s1075_s1 + $0x58] sm:$0xff] }
  0x2a   :  { %249 = vmatprep.subr.mxu1 %v204_v25  ;;  %127 = vmatpush1.msra.mxu0 %v76_v26  ;;  %v196_v41 = vld [vmem:[#allocation2 + $0x58] sm:$0xff]  ;;  %v68_v42 = vld [vmem:[%s1075_s1 + $0x50] sm:$0xff]  ;;  %v67_v44 = vld [vmem:[%s1075_s1 + $0x48] sm:$0xff] }
  0x2b   :  { %250 = vmatpush1.msra.mxu1 %v203_v27  ;;  %128 = vmatprep.subr.mxu0 %v75_v28  ;;  %v195_v43 = vld [vmem:[#allocation2 + $0x50] sm:$0xff]  ;;  %v194_v45 = vld [vmem:[#allocation2 + $0x48] sm:$0xff]  ;;  %v66_v46 = vld [vmem:[%s1075_s1 + $0x40] sm:$0xff] }
  0x2c   :  { %251 = vmatprep.subr.mxu1 %v202_v29  ;;  %129 = vmatpush1.msra.mxu0 %v74_v30  ;;  %v193_v47 = vld [vmem:[#allocation2 + $0x40] sm:$0xff]  ;;  %v65_v48 = vld [vmem:[%s1075_s1 + $0x38] sm:$0xff]  ;;  %v64_v50 = vld [vmem:[%s1075_s1 + $0x30] sm:$0xff] }
  0x2d   :  { %252 = vmatpush1.msra.mxu1 %v201_v31  ;;  %130 = vmatprep.subr.mxu0 %v73_v32  ;;  %v192_v49 = vld [vmem:[#allocation2 + $0x38] sm:$0xff]  ;;  %v191_v51 = vld [vmem:[#allocation2 + $0x30] sm:$0xff]  ;;  %v63_v52 = vld [vmem:[%s1075_s1 + $0x28] sm:$0xff] }
  0x2e   :  { %253 = vmatprep.subr.mxu1 %v200_v33  ;;  %131 = vmatpush1.msra.mxu0 %v72_v34  ;;  %v190_v53 = vld [vmem:[#allocation2 + $0x28] sm:$0xff]  ;;  %v62_v54 = vld [vmem:[%s1075_s1 + $0x20] sm:$0xff]  ;;  %v61_v56 = vld [vmem:[%s1075_s1 + $0x18] sm:$0xff] }
  0x2f   :  { %254 = vmatpush1.msra.mxu1 %v199_v35  ;;  %132 = vmatprep.subr.mxu0 %v71_v36  ;;  %v189_v55 = vld [vmem:[#allocation2 + $0x20] sm:$0xff]  ;;  %v188_v57 = vld [vmem:[#allocation2 + $0x18] sm:$0xff]  ;;  %v60_v58 = vld [vmem:[%s1075_s1 + $0x10] sm:$0xff] }
  0x30   :  { %255 = vmatprep.subr.mxu1 %v198_v37  ;;  %133 = vmatpush1.msra.mxu0 %v70_v38  ;;  %v187_v59 = vld [vmem:[#allocation2 + $0x10] sm:$0xff]  ;;  %v59_v60 = vld [vmem:[%s1075_s1 + $0x8] sm:$0xff]  ;;  %v58_v62 = vld [vmem:[%s1075_s1] sm:$0xff] }
  0x31   :  { %256 = vmatpush1.msra.mxu1 %v197_v39  ;;  %134 = vmatprep.subr.mxu0 %v69_v40  ;;  %v186_v61 = vld [vmem:[#allocation2 + $0x8] sm:$0xff]  ;;  %v185_v63 = vld [vmem:[#allocation2] sm:$0xff]  ;;  %v97_v0 = vld [vmem:[%s1075_s1 + $0x138] sm:$0xff]  ;;  %v100_v39 = vlaneseq }
  0x32   :  { %257 = vmatprep.subr.mxu1 %v196_v41  ;;  %135 = vmatpush1.msra.mxu0 %v68_v42  ;;  %v224_v1 = vld [vmem:[#allocation2 + $0x138] sm:$0xff]  ;;  %v96_v2 = vld [vmem:[%s1075_s1 + $0x130] sm:$0xff]  ;;  %v95_v4 = vld [vmem:[%s1075_s1 + $0x128] sm:$0xff] }
  0x33   :  { %258 = vmatpush1.msra.mxu1 %v195_v43  ;;  %136 = vmatprep.subr.mxu0 %v67_v44  ;;  %v223_v3 = vld [vmem:[#allocation2 + $0x130] sm:$0xff]  ;;  %v222_v5 = vld [vmem:[#allocation2 + $0x128] sm:$0xff]  ;;  %v94_v6 = vld [vmem:[%s1075_s1 + $0x120] sm:$0xff]  ;;  %v101_v40 = vshrl.u32 %v100_v39, 7 }
  0x34   :  { %259 = vmatprep.subr.mxu1 %v194_v45  ;;  %137 = vmatpush1.msra.mxu0 %v66_v46  ;;  %v221_v7 = vld [vmem:[#allocation2 + $0x120] sm:$0xff]  ;;  %v93_v8 = vld [vmem:[%s1075_s1 + $0x118] sm:$0xff]  ;;  %v92_v10 = vld [vmem:[%s1075_s1 + $0x110] sm:$0xff] }
  0x35   :  { %260 = vmatpush1.msra.mxu1 %v193_v47  ;;  %138 = vmatprep.subr.mxu0 %v65_v48  ;;  %v220_v9 = vld [vmem:[#allocation2 + $0x118] sm:$0xff]  ;;  %v219_v11 = vld [vmem:[#allocation2 + $0x110] sm:$0xff]  ;;  %v91_v12 = vld [vmem:[%s1075_s1 + $0x108] sm:$0xff]  ;;  %v102_v41 = vsub.s32 0, %v101_v40  ;;  %v106_v44 = vsub.s32 1, %v101_v40 }
  0x36   :  { %261 = vmatprep.subr.mxu1 %v192_v49  ;;  %139 = vmatpush1.msra.mxu0 %v64_v50  ;;  %v218_v13 = vld [vmem:[#allocation2 + $0x108] sm:$0xff]  ;;  %v90_v14 = vld [vmem:[%s1075_s1 + $0x100] sm:$0xff]  ;;  %v325_v18 = vld [vmem:[%s1079_s5 + $0x78] sm:$0xff] }
  0x37   :  { %262 = vmatpush1.msra.mxu1 %v191_v51  ;;  %140 = vmatprep.subr.mxu0 %v63_v52  ;;  %v882_v15 = vld [vmem:[%s1074_s0 + $0x8] sm:$0xff]  ;;  %v217_v16 = vld [vmem:[#allocation2 + $0x100] sm:$0xff]  ;;  %v324_v20 = vld [vmem:[%s1079_s5 + $0x70] sm:$0xff] }
  0x38   :  { %263 = vmatprep.subr.mxu1 %v190_v53  ;;  %141 = vmatpush1.msra.mxu0 %v62_v54  ;;  %v887_v17 = vld [vmem:[%s1074_s0] sm:$0xff]  ;;  %v323_v21 = vld [vmem:[%s1079_s5 + $0x68] sm:$0xff]  ;;  %v321_v23 = vld [vmem:[%s1079_s5 + $0x58] sm:$0xff] }
  0x39   :  { %264 = vmatpush1.msra.mxu1 %v189_v55  ;;  %142 = vmatprep.subr.mxu0 %v61_v56  ;;  %v322_v22 = vld [vmem:[%s1079_s5 + $0x60] sm:$0xff]  ;;  %v320_v24 = vld [vmem:[%s1079_s5 + $0x50] sm:$0xff]  ;;  %v319_v25 = vld [vmem:[%s1079_s5 + $0x48] sm:$0xff] }
  0x3a   :  { %265 = vmatprep.subr.mxu1 %v188_v57  ;;  %143 = vmatpush1.msra.mxu0 %v60_v58  ;;  %v318_v26 = vld [vmem:[%s1079_s5 + $0x40] sm:$0xff]  ;;  %v317_v27 = vld [vmem:[%s1079_s5 + $0x38] sm:$0xff]  ;;  %v316_v28 = vld [vmem:[%s1079_s5 + $0x30] sm:$0xff] }
  0x3b   :  { %266 = vmatpush1.msra.mxu1 %v187_v59  ;;  %144 = vmatprep.subr.mxu0 %v59_v60  ;;  %v315_v29 = vld [vmem:[%s1079_s5 + $0x28] sm:$0xff]  ;;  %v314_v30 = vld [vmem:[%s1079_s5 + $0x20] sm:$0xff]  ;;  %v313_v31 = vld [vmem:[%s1079_s5 + $0x18] sm:$0xff] }
  0x3c   :  { %267 = vmatprep.subr.mxu1 %v186_v61  ;;  %145 = vmatpush1.msra.mxu0 %v58_v62  ;;  %v312_v32 = vld [vmem:[%s1079_s5 + $0x10] sm:$0xff]  ;;  %v311_v33 = vld [vmem:[%s1079_s5 + $0x8] sm:$0xff]  ;;  %v310_v34 = vld [vmem:[%s1079_s5] sm:$0xff] }
  0x3d   :  { %268 = vmatpush1.msra.mxu1 %v185_v63  ;;  %170 = vmatprep.subr.mxu0 %v97_v0  ;;  %v329_v35 = vld [vmem:[%s1079_s5 + $0x98] sm:$0xff]  ;;  %v328_v36 = vld [vmem:[%s1079_s5 + $0x90] sm:$0xff]  ;;  %v327_v37 = vld [vmem:[%s1079_s5 + $0x88] sm:$0xff] }
  0x3e   :  { %293 = vmatprep.subr.mxu1 %v224_v1  ;;  %171 = vmatpush2.msra.mxu0 %v96_v2  ;;  %v326_v38 = vld [vmem:[%s1079_s5 + $0x80] sm:$0xff] }
  0x3f   :  { %294 = vmatpush2.msra.mxu1 %v223_v3  ;;  %172 = vmatprep.subr.mxu0 %v95_v4  ;;  %v98_v42 = vld [vmem:[%s1076_s2] sm:$0x3]  ;;  %v416_v3 = vld [vmem:[#allocation5 + $0x8] sm:$0x1f] }
  0x40   :  { %295 = vmatprep.subr.mxu1 %v222_v5  ;;  %173 = vmatpush2.msra.mxu0 %v94_v6  ;;  %v225_v43 = vld [vmem:[%s1078_s4] sm:$0x3]  ;;  %v103_v45 = vrot.slane %v98_v42, %v102_v41  ;;  %v107_v47 = vrot.slane %v98_v42, %v106_v44 }
  0x41   :  { %296 = vmatpush2.msra.mxu1 %v221_v7  ;;  %174 = vmatprep.subr.mxu0 %v93_v8  ;;  %v230_v46 = vrot.slane %v225_v43, %v102_v41  ;;  %v234_v48 = vrot.slane %v225_v43, %v106_v44  ;;  %v415_v4 = vld [vmem:[#allocation5] sm:$0x1f]  ;;  %v515_v8 = vld [vmem:[%s1081_s7 + $0x78] sm:$0xff] }
  0x42   :  { %297 = vmatprep.subr.mxu1 %v220_v9  ;;  %175 = vmatpush2.msra.mxu0 %v92_v10  ;;  %v514_v9 = vld [vmem:[%s1081_s7 + $0x70] sm:$0xff]  ;;  %v513_v10 = vld [vmem:[%s1081_s7 + $0x68] sm:$0xff] }
  0x43   :  { %298 = vmatpush2.msra.mxu1 %v219_v11  ;;  %176 = vmatprep.subr.mxu0 %v91_v12  ;;  %v512_v11 = vld [vmem:[%s1081_s7 + $0x60] sm:$0xff]  ;;  %v511_v12 = vld [vmem:[%s1081_s7 + $0x58] sm:$0xff] }
  0x44   :  { %299 = vmatprep.subr.mxu1 %v218_v13  ;;  %177 = vmatpush2.msra.mxu0 %v90_v14  ;;  %v510_v13 = vld [vmem:[%s1081_s7 + $0x50] sm:$0xff]  ;;  %v509_v14 = vld [vmem:[%s1081_s7 + $0x48] sm:$0xff] }
  0x45   :  { %617 = vmatprep.mubr.msk.f32.mxu0 %vm110_vm0, %v882_v15  ;;  %300 = vmatpush2.msra.mxu1 %v217_v16  ;;  %v508_v16 = vld [vmem:[%s1081_s7 + $0x40] sm:$0xff] }
  0x46   :  { %618 = vmatprep.mubr.msk.f32.mxu1 %vm110_vm0, %v882_v15  ;;  %179 = vmatmul.mubr.f32.vlgmr.msra.gmra.mxu0 %v887_v17 }
  0x47   :  { %302 = vmatmul.mubr.f32.vlgmr.msra.gmra.mxu1 %v887_v17  ;;  %333 = vmatprep.subr.mxu0 %v706_v19 }
  0x48   :  { %491 = vmatprep.mubr.f32.mxu1 %v706_v19  ;;  %334 = vmatpush1.msra.mxu0 %v325_v18  ;;  %v507_v18 = vld [vmem:[%s1081_s7 + $0x38] sm:$0xff] }
  0x49   :  { %335 = vmatprep.subr.mxu0 %v706_v19  ;;  %620 = vmatprep.subr.msk.mxu1 %vm420_vm2, %v416_v3 }
  0x4a   :  { %336 = vmatpush1.msra.mxu0 %v324_v20  ;;  %621 = vmatpush1.msk.msra.mxu1 %vm420_vm2, %v415_v4  ;;  %v506_v20 = vld [vmem:[%s1081_s7 + $0x30] sm:$0xff] }
  0x4b   :  { %337 = vmatprep.subr.mxu0 %v706_v19  ;;  %523 = vmatprep.subr.mxu1 %v706_v19 }
  0x4c   :  { %338 = vmatpush1.msra.mxu0 %v323_v21  ;;  %v505_v21 = vld [vmem:[%s1081_s7 + $0x28] sm:$0xff] }
  0x4d   :  { %339 = vmatprep.subr.mxu0 %v706_v19 }
  0x4e   :  { %340 = vmatpush1.msra.mxu0 %v322_v22  ;;  %v504_v22 = vld [vmem:[%s1081_s7 + $0x20] sm:$0xff] }
  0x4f   :  { %341 = vmatprep.subr.mxu0 %v706_v19 }
  0x50   :  { %342 = vmatpush1.msra.mxu0 %v321_v23  ;;  %v503_v23 = vld [vmem:[%s1081_s7 + $0x18] sm:$0xff] }
  0x51   :  { %343 = vmatprep.subr.mxu0 %v706_v19 }
  0x52   :  { %344 = vmatpush1.msra.mxu0 %v320_v24  ;;  %v502_v24 = vld [vmem:[%s1081_s7 + $0x10] sm:$0xff] }
  0x53   :  { %345 = vmatprep.subr.mxu0 %v706_v19 }
  0x54   :  { %346 = vmatpush1.msra.mxu0 %v319_v25  ;;  %v501_v25 = vld [vmem:[%s1081_s7 + $0x8] sm:$0xff] }
  0x55   :  { %347 = vmatprep.subr.mxu0 %v706_v19 }
  0x56   :  { %348 = vmatpush1.msra.mxu0 %v318_v26  ;;  %v500_v26 = vld [vmem:[%s1081_s7] sm:$0xff] }
  0x57   :  { %349 = vmatprep.subr.mxu0 %v706_v19 }
  0x58   :  { %350 = vmatpush1.msra.mxu0 %v317_v27  ;;  %v519_v27 = vld [vmem:[%s1081_s7 + $0x98] sm:$0xff] }
  0x59   :  { %351 = vmatprep.subr.mxu0 %v706_v19 }
  0x5a   :  { %352 = vmatpush1.msra.mxu0 %v316_v28  ;;  %v518_v28 = vld [vmem:[%s1081_s7 + $0x90] sm:$0xff] }
  0x5b   :  { %353 = vmatprep.subr.mxu0 %v706_v19 }
  0x5c   :  { %354 = vmatpush1.msra.mxu0 %v315_v29  ;;  %v517_v29 = vld [vmem:[%s1081_s7 + $0x88] sm:$0xff] }
  0x5d   :  { %355 = vmatprep.subr.mxu0 %v706_v19 }
  0x5e   :  { %356 = vmatpush1.msra.mxu0 %v314_v30  ;;  %v516_v30 = vld [vmem:[%s1081_s7 + $0x80] sm:$0xff]  ;;  %s707_s7 = smov [#allocation7]  }
  0x5f   :  { %357 = vmatprep.subr.mxu0 %v706_v19  ;;  %s607_s1 = sshll.u32 %s707_s7, 4  ;;  %s608_s1 = int_to_ptr.vmem [resolvable:$true] %s607_s1 }
  0x60   :  { %358 = vmatpush1.msra.mxu0 %v313_v31  ;;  %s676_s27 = scalar_lea.vmem %s608_s1, 128  ;;  %p681_p11 = scmp.lt.s32.totalorder %s608_s1, %s608_s1 }
  0x61   :  { %359 = vmatprep.subr.mxu0 %v706_v19  ;;  %p677_p10 = scmp.ne.s32.totalorder %s608_s1, %s676_s27  ;;  %p682_p12 = scmp.lt.s32.totalorder %s676_s27, %s676_s27 }
  0x62   :  { %360 = vmatpush1.msra.mxu0 %v312_v32 }
  0x63   :  { %361 = vmatprep.subr.mxu0 %v706_v19  ;;  %p683_p13 = por %p682_p12, %p681_p11 }
  0x64   :  { %362 = vmatpush1.msra.mxu0 %v311_v33 }
  0x65   :  { %363 = vmatprep.subr.mxu0 %v706_v19  ;;  %p684_p0 = pnand %p683_p13, %p677_p10 }
  0x66   :  { %364 = vmatpush1.msra.mxu0 %v310_v34 }
  0x67   :  { %389 = vmatprep.subr.mxu0 %v706_v19 }
  0x68   :  { %390 = vmatpush2.msra.mxu0 %v329_v35 }
  0x69   :  { %391 = vmatprep.subr.mxu0 %v706_v19 }
  0x6a   :  { %392 = vmatpush2.msra.mxu0 %v328_v36 }
  0x6b   :  { %393 = vmatprep.subr.mxu0 %v706_v19 }
  0x6c   :  { %394 = vmatpush2.msra.mxu0 %v327_v37 }
  0x6d   :  { %395 = vmatprep.subr.mxu0 %v706_v19 }
  0x6e   :  { %396 = vmatpush2.msra.mxu0 %v326_v38 }
 0x106   :  { %v180_v49 = vpop.f32.mrf.mxu0 }
 0x107   :  { %v303_v50 = vpop.f32.mrf.mxu1  ;;  %v181_v51 = vadd.f32 %v180_v49, %v103_v45 }
 0x108   :  { %v304_v52 = vadd.f32 %v303_v50, %v230_v46  ;;  %v182_v53 = vpop.f32.mrf.mxu0 }
 0x109   :  { %v305_v54 = vpop.f32.mrf.mxu1  ;;  %v183_v55 = vadd.f32 %v182_v53, %v107_v47 }
 0x10a   :  { %v306_v56 = vadd.f32 %v305_v54, %v234_v48  ;;  %v308_v58 = vmul.f32 %v304_v52, %v181_v51 }
 0x10c   :  { %v309_v57 = vmul.f32 %v306_v56, %v183_v55 }
 0x10e   :  { %619 = vmatprep.mubr.msk.f32.mxu0 %vm110_vm0, %v309_v57 }
 0x10f   :  { %398 = vmatmul.mubr.f32.vlgmr.msra.gmra.mxu0 %v308_v58 }
 0x1cf   :  { %v399_v59 = vpop.f32.mrf.mxu0 }
 0x1d0   :  { %v404_v60 = vsel %vm403_vm1, %v399_v59, -inf }
 0x1d1   :  { %405 = vmax.xlane.f32.xlu0 %v404_v60  ;;  %v401_v61 = vpop.f32.mrf.mxu0 }
 0x25a   :  { %v406_v62 = vpop.xlane.xlu0 %405 }
 0x25b   :  { %v407_v63 = vsub.f32 %v399_v59, %v406_v62 }
 0x25d   :  { %v408_v0 = vmul.f32 1.442695, %v407_v63 }
 0x25f   :  { %630 = vpow2.f32 %v408_v0 }
 0x26c   :  { %v631_v1 = vpop.eup %630 }
 0x26d   :  { %v410_v2 = vsel %vm403_vm1, %v631_v1, 0.0 }
 0x26e   :  { %411 = vadd.xlane.f32.xlu0 %v410_v2 }
 0x2f7   :  { %v412_v5 = vpop.xlane.xlu0 %411 }
 0x2f8   :  { %632 = vrcp.f32 %v412_v5 }
 0x305   :  { %v633_v6 = vpop.eup %632 }
 0x306   :  { %v414_v7 = vmul.f32 %v633_v6, %v631_v1 }
 0x308   :  { %622 = vmatmul.mubr.msk.f32.vlgmr.msra.gmra.mxu1 %vm403_vm1, %v414_v7 }
 0x309   :  { %524 = vmatpush1.msra.mxu1 %v515_v8 }
 0x30a   :  { %525 = vmatprep.subr.mxu1 %v706_v19 }
 0x30b   :  { %526 = vmatpush1.msra.mxu1 %v514_v9 }
 0x30c   :  { %527 = vmatprep.subr.mxu1 %v706_v19 }
 0x30d   :  { %528 = vmatpush1.msra.mxu1 %v513_v10 }
 0x30e   :  { %529 = vmatprep.subr.mxu1 %v706_v19 }
 0x30f   :  { %530 = vmatpush1.msra.mxu1 %v512_v11 }
 0x310   :  { %531 = vmatprep.subr.mxu1 %v706_v19 }
 0x311   :  { %532 = vmatpush1.msra.mxu1 %v511_v12 }
 0x312   :  { %533 = vmatprep.subr.mxu1 %v706_v19 }
 0x313   :  { %534 = vmatpush1.msra.mxu1 %v510_v13 }
 0x314   :  { %535 = vmatprep.subr.mxu1 %v706_v19 }
 0x315   :  { %536 = vmatpush1.msra.mxu1 %v509_v14 }
 0x316   :  { %537 = vmatprep.subr.mxu1 %v706_v19 }
 0x317   :  { %538 = vmatpush1.msra.mxu1 %v508_v16 }
 0x318   :  { %539 = vmatprep.subr.mxu1 %v706_v19 }
 0x319   :  { %540 = vmatpush1.msra.mxu1 %v507_v18 }
 0x31a   :  { %541 = vmatprep.subr.mxu1 %v706_v19 }
 0x31b   :  { %542 = vmatpush1.msra.mxu1 %v506_v20 }
 0x31c   :  { %543 = vmatprep.subr.mxu1 %v706_v19 }
 0x31d   :  { %544 = vmatpush1.msra.mxu1 %v505_v21 }
 0x31e   :  { %545 = vmatprep.subr.mxu1 %v706_v19 }
 0x31f   :  { %546 = vmatpush1.msra.mxu1 %v504_v22 }
 0x320   :  { %547 = vmatprep.subr.mxu1 %v706_v19 }
 0x321   :  { %548 = vmatpush1.msra.mxu1 %v503_v23 }
 0x322   :  { %549 = vmatprep.subr.mxu1 %v706_v19 }
 0x323   :  { %550 = vmatpush1.msra.mxu1 %v502_v24 }
 0x324   :  { %551 = vmatprep.subr.mxu1 %v706_v19 }
 0x325   :  { %552 = vmatpush1.msra.mxu1 %v501_v25 }
 0x326   :  { %553 = vmatprep.subr.mxu1 %v706_v19 }
 0x327   :  { %554 = vmatpush1.msra.mxu1 %v500_v26 }
 0x328   :  { %579 = vmatprep.subr.mxu1 %v706_v19 }
 0x329   :  { %580 = vmatpush2.msra.mxu1 %v519_v27 }
 0x32a   :  { %581 = vmatprep.subr.mxu1 %v706_v19 }
 0x32b   :  { %582 = vmatpush2.msra.mxu1 %v518_v28 }
 0x32c   :  { %583 = vmatprep.subr.mxu1 %v706_v19 }
 0x32d   :  { %584 = vmatpush2.msra.mxu1 %v517_v29 }
 0x32e   :  { %585 = vmatprep.subr.mxu1 %v706_v19 }
 0x32f   :  { %586 = vmatpush2.msra.mxu1 %v516_v30 }
 0x3c8   :  { %v493_v31 = vpop.f32.mrf.mxu1 }
 0x3c9   :  { %v498_v34 = vmul.f32 %v493_v31, %v887_v17 }
 0x3ca   :  { %v495_v32 = vpop.f32.mrf.mxu1 }
 0x3cb   :  { %v499_v33 = vmul.f32 %v495_v32, %v882_v15 }
 0x3cd   :  { %623 = vmatprep.mubr.msk.f32.mxu1 %vm110_vm0, %v499_v33 }
 0x3ce   :  { %588 = vmatmul.mubr.f32.vlgmr.msra.gmra.mxu1 %v498_v34 }
 0x48e   :  { %v589_v35 = vpop.f32.mrf.mxu1 }
 0x48f   :  { %v593_v36 = vmul.f32 %v589_v35, %v589_v35 }
 0x490   :  { %v591_v37 = vpop.f32.mrf.mxu1 }
 0x491   :  { %v594_v38 = vsel %vm110_vm0, %v593_v36, 0.0 }
 0x492   :  { %595 = vadd.xlane.f32.xlu1 %v594_v38 }
 0x51b   :  { %v596_v39 = vpop.xlane.xlu1 %595 }
 0x51c   :  { %v597_v40 = vmax.f32 %v596_v39, 1e-24 }
 0x51e   :  { %634 = vrsqrt.f32 %v597_v40 }
 0x52b   :  { %v635_v19 = vpop.eup %634 }
 0x52c   :  { %v599_v41 = vmul.f32 %v635_v19, %v589_v35 }
 0x52e   :  { %600 = vst.msk [vmem:[#allocation7] sm:$0xff] %vm110_vm0, %v599_v41 }
 0x52f   :  { %687 = shalt.err (!%p684_p0)
}
 0x530   :  { %610 = dma.vmem_to_hbm [thread:$0]  %s608_s1, 128, %s1082_s8, [#allocation4]  }
 0x531   :  { %700 = dma.done.wait [#allocation4], 128  }
 0x532   :  { %701 = vsyncadd [#allocation4], 4294967168 }
 0x533   :  { %614 = vsyncpa [#allocation3], 1 }
 0x534   :  { %615 = vsyncpa [#allocation6], 1 }
 0x535   :  { %616 = vsyncpa [#allocation4], 1 }

</bundles_post_ra>
